<compile_context>
chip_gen: v7x
topology: tpu7x:2x2x1
jax: 0.10.0
libtpu: 0.0.40
codegen_flags: <defaults>
</compile_context>

<pallas_src>
import jax
import jax.numpy as jnp
from jax import lax
from jax.experimental import pallas as pl
from jax.experimental.pallas import tpu as pltpu


def _pick_vmem_limit(frac=0.75, fallback=48 * 1024 * 1024):
    """~75% of physical VMEM (48 MiB on v7x's 64 MiB, 96 MiB on v5e/v6e's 128 MiB)."""
    try:
        cap = pltpu.get_tpu_info().vmem_capacity_bytes
        return int(cap * frac)
    except Exception:
        return fallback


# ---------------- Fused kernel: one-time dequant + row-tiled linear ----------------
def _fused_qlinear_kernel(x_ref, w_hbm_ref, b_ref, o_ref, wqt_ref, wraw_ref):
    # One-time (step 0): DMA the raw [N, K] weight HBM -> VMEM, fake quant-dequant,
    # transpose into the persistent [K, N] scratch used by every row tile.
    @pl.when(pl.program_id(0) == 0)
    def _():
        pltpu.sync_copy(w_hbm_ref, wraw_ref)            # single HBM read of the weight
        w = wraw_ref[...].astype(jnp.float32)           # [N, K]
        pmax = jnp.max(w)
        pmin = jnp.min(w)
        span = pmax - pmin
        degenerate = span <= 0.0
        safe_span = jnp.where(degenerate, 1.0, span)
        # bits = 8 -> scale_max = 127, scale_min = -128, scale = 255
        q = jnp.round((w - pmin) * (255.0 / safe_span) - 128.0)
        # max/min of `q` are analytically +127 / -128 whenever pmax > pmin, so
        # dequantize with those constants (saves two more cross-lane reductions).
        wq = (q + 128.0) * (safe_span / 255.0) + pmin
        # Degenerate (constant) weight: PyTorch would NaN; return weight unchanged.
        wq = jnp.where(degenerate, w, wq)
        wqt_ref[...] = wq.T                              # one-time XLU transpose -> [K, N]

    # Steady state: pure MXU row-tile matmul against the resident [K, N] weight.
    out = lax.dot_general(
        x_ref[...],
        wqt_ref[...],
        dimension_numbers=(((1,), (0,)), ((), ())),      # x[K] contracted with wqt[K]
        preferred_element_type=jnp.float32,
    )
    o_ref[...] = (out + b_ref[...]).astype(o_ref.dtype)


def q_linear_test(x, weight, bias, *, tm=512):
    """x: [..., in_features]; weight: [out_features, in_features]; bias: [out_features]."""
    out_features, in_features = weight.shape
    lead_shape = x.shape[:-1]
    x2d = x.reshape(-1, in_features).astype(jnp.float32)
    rows = x2d.shape[0]

    w = weight.astype(jnp.float32)
    b2d = bias.astype(jnp.float32).reshape(1, out_features)

    # Row tiling: single full-extent block if it fits, else cdiv grid with
    # Pallas-masked partial last tile (no jnp.pad of the activations).
    if rows <= tm:
        tm = rows
        grid_m = 1
    else:
        tm = max(8, (tm // 8) * 8)
        grid_m = pl.cdiv(rows, tm)

    flops = 2 * rows * in_features * out_features
    bytes_accessed = 4 * (
        rows * in_features                # x
        + out_features * in_features      # weight (read once)
        + out_features                    # bias
        + rows * out_features             # out
    )

    out = pl.pallas_call(
        _fused_qlinear_kernel,
        out_shape=jax.ShapeDtypeStruct((rows, out_features), jnp.float32),
        grid_spec=pltpu.PrefetchScalarGridSpec(
            num_scalar_prefetch=0,
            grid=(grid_m,),
            in_specs=[
                pl.BlockSpec((tm, in_features), lambda i: (i, 0)),   # streamed x row tiles
                pl.BlockSpec(memory_space=pl.ANY),                   # raw weight stays in HBM
                pl.BlockSpec((1, out_features), lambda i: (0, 0)),   # resident bias
            ],
            out_specs=pl.BlockSpec((tm, out_features), lambda i: (i, 0)),
            scratch_shapes=[
                pltpu.VMEM((in_features, out_features), jnp.float32),  # dequantized weight [K, N]
                pltpu.VMEM((out_features, in_features), jnp.float32),  # raw weight staging [N, K]
            ],
        ),
        compiler_params=pltpu.CompilerParams(
            # "arbitrary": the step-0 weight-dequant must precede all row tiles
            # on the same core (a "parallel" axis could split them across cores).
            dimension_semantics=("arbitrary",),
            vmem_limit_bytes=_pick_vmem_limit(),
        ),
        cost_estimate=pl.CostEstimate(
            flops=flops, transcendentals=0, bytes_accessed=bytes_accessed
        ),
    )(x2d, w, b2d)

    return out.reshape(*lead_shape, out_features).astype(x.dtype)


if __name__ == "__main__":
    # Small, module-consistent shapes: batch=2, seq=8, in_features=32, out_features=32
    batch, seq, in_features, out_features = 2, 8, 32, 32

    key = jax.random.PRNGKey(0)
    kx, kw, kb = jax.random.split(key, 3)

    x = jax.random.normal(kx, (batch, seq, in_features), dtype=jnp.float32)
    weight = jax.random.normal(kw, (out_features, in_features), dtype=jnp.float32) * 0.1
    bias = jax.random.normal(kb, (out_features,), dtype=jnp.float32) * 0.1

    out = q_linear_test(x, weight, bias)
    jax.block_until_ready(out)

    # Reference check in plain JAX (PyTorch-faithful math, including the explicit
    # qmax/qmin reductions) to validate the kernel's constant substitution.
    def _quantization_ref(w, bits=8):
        smax = 2 ** (bits - 1) - 1
        smin = -(2 ** (bits - 1))
        pmax = jnp.max(w)
        pmin = jnp.min(w)
        q = jnp.round((w - pmin) * ((smax - smin) / (pmax - pmin)) + smin)
        qmax = jnp.max(q)
        qmin = jnp.min(q)
        return (q - qmin) * ((pmax - pmin) / (qmax - qmin)) + pmin

    ref = jnp.einsum("bsi,oi->bso", x, _quantization_ref(weight)) + bias
    assert out.shape == (batch, seq, out_features)
    assert jnp.allclose(out, ref, atol=1e-4, rtol=1e-4)

    print("KERNEL_OK")
</pallas_src>

<mosaic_0001>
module attributes {stable_mosaic.version = 11 : i64} {
  func.func @_fused_qlinear_kernel(%arg0: i32, %arg1: memref<16x32xf32, #tpu.memory_space<vmem>>, %arg2: memref<32x32xf32, #tpu.memory_space<any>>, %arg3: memref<1x32xf32, #tpu.memory_space<vmem>>, %arg4: memref<16x32xf32, #tpu.memory_space<vmem>>, %arg5: memref<32x32xf32, #tpu.memory_space<vmem>>, %arg6: memref<32x32xf32, #tpu.memory_space<vmem>>) attributes {dimension_semantics = [#tpu.dimension_semantics<arbitrary>], iteration_bounds = array<i64: 1>, scalar_prefetch = 0 : i64, scratch_operands = 2 : i64, tpu.core_type = #tpu.core_type<tc>, window_params = [{transform_indices = @transform_0, window_bounds = array<i64: 16, 32>}, {}, {pipeline_mode = #tpu.pipeline_mode<synchronous>, transform_indices = @transform_2, window_bounds = array<i64: 1, 32>}, {transform_indices = @transform_3, window_bounds = array<i64: 16, 32>}]} {
    %c0_i32 = arith.constant 0 : i32
    %0 = arith.cmpi eq, %arg0, %c0_i32 : i32
    %1 = arith.extui %0 : i1 to i32
    %c0_i32_0 = arith.constant 0 : i32
    %2 = arith.cmpi ne, %1, %c0_i32_0 : i32
    scf.if %2 {
      "tpu.region"() ({
        %40 = tpu.sem_alloc : memref<!tpu.dma_semaphore, #tpu.memory_space<semaphore_mem>>
        tpu.enqueue_dma source(%arg2 : memref<32x32xf32, #tpu.memory_space<any>>) target(%arg6 : memref<32x32xf32, #tpu.memory_space<vmem>>) target_semaphore(%40 : memref<!tpu.dma_semaphore, #tpu.memory_space<semaphore_mem>>)
        tpu.wait_dma2 semaphore(%40 : memref<!tpu.dma_semaphore, #tpu.memory_space<semaphore_mem>>) src(%arg2 : memref<32x32xf32, #tpu.memory_space<any>>) dst(%arg6 : memref<32x32xf32, #tpu.memory_space<vmem>>)
        tpu.yield
      }) : () -> ()
      %c0_8 = arith.constant 0 : index
      %c0_9 = arith.constant 0 : index
      %10 = vector.load %arg6[%c0_8, %c0_9] : memref<32x32xf32, #tpu.memory_space<vmem>>, vector<32x32xf32>
      %11 = vector.shape_cast %10 : vector<32x32xf32> to vector<1x32x32xf32>
      %cst_10 = arith.constant dense<0xFF800000> : vector<1xf32>
      %12 = vector.multi_reduction <maximumf>, %11, %cst_10 [1, 2] : vector<1x32x32xf32> to vector<1xf32>
      %13 = vector.shape_cast %12 : vector<1xf32> to vector<1x1x1xf32>
      %14 = vector.extract %13[0, 0, 0] : f32 from vector<1x1x1xf32>
      %15 = vector.shape_cast %10 : vector<32x32xf32> to vector<1x32x32xf32>
      %cst_11 = arith.constant dense<0x7F800000> : vector<1xf32>
      %16 = vector.multi_reduction <minimumf>, %15, %cst_11 [1, 2] : vector<1x32x32xf32> to vector<1xf32>
      %17 = vector.shape_cast %16 : vector<1xf32> to vector<1x1x1xf32>
      %18 = vector.extract %17[0, 0, 0] : f32 from vector<1x1x1xf32>
      %19 = arith.subf %14, %18 : f32
      %cst_12 = arith.constant 0.000000e+00 : f32
      %20 = arith.cmpf ole, %19, %cst_12 : f32
      %cst_13 = arith.constant 1.000000e+00 : f32
      %21 = arith.select %20, %cst_13, %19 : f32
      %22 = vector.broadcast %18 : f32 to vector<32x32xf32>
      %23 = arith.subf %10, %22 : vector<32x32xf32>
      %cst_14 = arith.constant 2.550000e+02 : f32
      %24 = arith.divf %cst_14, %21 : f32
      %25 = vector.broadcast %24 : f32 to vector<32x32xf32>
      %26 = arith.mulf %23, %25 : vector<32x32xf32>
      %cst_15 = arith.constant 1.280000e+02 : f32
      %27 = vector.broadcast %cst_15 : f32 to vector<32x32xf32>
      %28 = arith.subf %26, %27 : vector<32x32xf32>
      %29 = math.roundeven %28 : vector<32x32xf32>
      %cst_16 = arith.constant 1.280000e+02 : f32
      %30 = vector.broadcast %cst_16 : f32 to vector<32x32xf32>
      %31 = arith.addf %29, %30 : vector<32x32xf32>
      %cst_17 = arith.constant 2.550000e+02 : f32
      %32 = arith.divf %21, %cst_17 : f32
      %33 = vector.broadcast %32 : f32 to vector<32x32xf32>
      %34 = arith.mulf %31, %33 : vector<32x32xf32>
      %35 = vector.broadcast %18 : f32 to vector<32x32xf32>
      %36 = arith.addf %34, %35 : vector<32x32xf32>
      %37 = arith.select %20, %10, %36 : vector<32x32xf32>
      %38 = tpu.transpose %37, [1, 0] : vector<32x32xf32> -> vector<32x32xf32>
      %c0_18 = arith.constant 0 : index
      %c0_19 = arith.constant 0 : index
      %39 = vector.load %arg5[%c0_18, %c0_19] : memref<32x32xf32, #tpu.memory_space<vmem>>, vector<32x32xf32>
      tpu.vector_store %arg5[%c0_18, %c0_19], %38 {strides = array<i32>} : memref<32x32xf32, #tpu.memory_space<vmem>>, vector<32x32xf32>,
    } else {
    }
    %c0 = arith.constant 0 : index
    %c0_1 = arith.constant 0 : index
    %3 = vector.load %arg1[%c0, %c0_1] : memref<16x32xf32, #tpu.memory_space<vmem>>, vector<16x32xf32>
    %c0_2 = arith.constant 0 : index
    %c0_3 = arith.constant 0 : index
    %4 = vector.load %arg5[%c0_2, %c0_3] : memref<32x32xf32, #tpu.memory_space<vmem>>, vector<32x32xf32>
    %cst = arith.constant dense<0.000000e+00> : vector<16x32xf32>
    %5 = tpu.matmul %3, %4, %cst {dimension_numbers = #tpu.dot_dimension_numbers<[1], [0], [0], [1], [0, 0, 1, 1], [], []>} : vector<16x32xf32>, vector<32x32xf32>, vector<16x32xf32> -> vector<16x32xf32>
    %c0_4 = arith.constant 0 : index
    %c0_5 = arith.constant 0 : index
    %6 = vector.load %arg3[%c0_4, %c0_5] : memref<1x32xf32, #tpu.memory_space<vmem>>, vector<1x32xf32>
    %7 = vector.broadcast %6 : vector<1x32xf32> to vector<16x32xf32>
    %8 = arith.addf %5, %7 : vector<16x32xf32>
    %c0_6 = arith.constant 0 : index
    %c0_7 = arith.constant 0 : index
    %9 = vector.load %arg4[%c0_6, %c0_7] : memref<16x32xf32, #tpu.memory_space<vmem>>, vector<16x32xf32>
    tpu.vector_store %arg4[%c0_6, %c0_7], %8 {strides = array<i32>} : memref<16x32xf32, #tpu.memory_space<vmem>>, vector<16x32xf32>,
    return
  }
  func.func @transform_0(%arg0: i32) -> (i32, i32) {
    %c0_i32 = arith.constant 0 : i32
    %c0_i32_0 = arith.constant 0 : i32
    return %arg0, %c0_i32 : i32, i32
  }
  func.func @transform_2(%arg0: i32) -> (i32, i32) {
    %c0_i32 = arith.constant 0 : i32
    %c0_i32_0 = arith.constant 0 : i32
    %c0_i32_1 = arith.constant 0 : i32
    return %c0_i32, %c0_i32_0 : i32, i32
  }
  func.func @transform_3(%arg0: i32) -> (i32, i32) {
    %c0_i32 = arith.constant 0 : i32
    %c0_i32_0 = arith.constant 0 : i32
    return %arg0, %c0_i32 : i32, i32
  }
}

</mosaic_0001>

<bundles_post_ra>
// kernel: tpu_custom_call.1
= control target key start
LH: loop header
LB: loop body
LE: loop exit
PB: predicated region body
PF: predicated region fallthrough
CT: control target
= control target key end

     0   :  { %8 = vsyncpa [#allocation5], 0  ;;  %s518_s0 = inlined_call_operand.hbm [shape: f32[16,32], index: 0, kind: input, shape index: {}]   ;;  %s519_s1 = inlined_call_operand.hbm [shape: f32[32,32], index: 1, kind: input, shape index: {}]   ;;  %s520_s2 = inlined_call_operand.vmem [shape: f32[1,32], index: 2, kind: input, shape index: {}]   ;;  %s521_s3 = inlined_call_operand.hbm [shape: f32[16,32], index: 3, kind: output, shape index: {}]  }
   0x1   :  { %9 = vsyncpa [#allocation6], 0  ;;  %s402_s12 = smov [#allocation4]   ;;  %s330_s16 = scalar_lea.hbm %s518_s0, 256 }
   0x2   :  { %s15_s13 = sshll.u32 %s402_s12, 4  ;;  %p331_p0 = scmp.ne.s32.totalorder %s518_s0, %s330_s16  ;;  %s16_s13 = int_to_ptr.vmem [resolvable:$true] %s15_s13 }
   0x3   :  { %p334_p1 = scmp.lt.u32.totalorder %s330_s16, %s518_s0 }
   0x5   :  { %p336_p2 = pnand %p334_p1, %p331_p0 }
   0x7   :  { %339 = shalt.err (!%p336_p2)
}
   0x8   :  { %s340_s21 = scalar_lea.vmem %s16_s13, 256  ;;  %p345_p4 = scmp.lt.s32.totalorder %s16_s13, %s16_s13 }
   0x9   :  { %p341_p3 = scmp.ne.s32.totalorder %s16_s13, %s340_s21  ;;  %p346_p5 = scmp.lt.s32.totalorder %s340_s21, %s340_s21 }
   0xb   :  { %p347_p6 = por %p346_p5, %p345_p4 }
   0xd   :  { %p348_p7 = pnand %p347_p6, %p341_p3 }
   0xf   :  { %351 = shalt.err (!%p348_p7)
}
  0x10   :  { %s403_s22 = smov 128   ;;  %s404_s23 = smov 8  }
  0x11   :  { %21 = dma.hbm_to_vmem [thread:$0]  %s518_s0, 256, %s16_s13, [#allocation5], %s403_s22, %s403_s22, %s404_s23  }
  0x12   :  { %396 = dma.done.wait [#allocation5], 256  }
  0x13   :  { %397 = vsyncadd [#allocation5], 4294967040 }
  0x14   :  { %s405_s26 = smov [#allocation3]   ;;  %s352_s30 = scalar_lea.hbm %s519_s1, 512 }
  0x15   :  { %s38_s27 = sshll.u32 %s405_s26, 4  ;;  %p353_p8 = scmp.ne.s32.totalorder %s519_s1, %s352_s30  ;;  %s39_s27 = int_to_ptr.vmem [resolvable:$true] %s38_s27 }
  0x16   :  { %p356_p9 = scmp.lt.u32.totalorder %s352_s30, %s519_s1 }
  0x18   :  { %p358_p10 = pnand %p356_p9, %p353_p8 }
  0x1a   :  { %361 = shalt.err (!%p358_p10)  }
  0x1b   :  { %s362_s0 = scalar_lea.vmem %s39_s27, 512  ;;  %p367_p12 = scmp.lt.s32.totalorder %s39_s27, %s39_s27 }
  0x1c   :  { %p363_p11 = scmp.ne.s32.totalorder %s39_s27, %s362_s0  ;;  %p368_p13 = scmp.lt.s32.totalorder %s362_s0, %s362_s0 }
  0x1e   :  { %p369_p0 = por %p368_p13, %p367_p12 }
  0x20   :  { %p370_p1 = pnand %p369_p0, %p363_p11 }
  0x22   :  { %373 = shalt.err (!%p370_p1)  }
  0x23   :  { %41 = dma.hbm_to_vmem [thread:$0]  %s519_s1, 512, %s39_s27, [#allocation8] }
  0x24   :  { %398 = dma.done.wait [#allocation8], 512 }
  0x25   :  { %399 = vsyncadd [#allocation8], 4294966784  ;;  %v454_v0 = vld [vmem:[#allocation3] sm:$0xff]  ;;  %v456_v1 = vld [vmem:[#allocation3 + $0x8] sm:$0xff]  ;;  %vm49_vm0 = vcmask 261120   ;;  %s406_s19 = smov [#allocation7]  }
  0x26   :  { %v458_v2 = vld [vmem:[#allocation3 + $0x10] sm:$0xff]  ;;  %v460_v3 = vld [vmem:[#allocation3 + $0x18] sm:$0xff]  ;;  %v50_v4 = vsel %vm49_vm0, %v454_v0, -inf  ;;  %v51_v5 = vsel %vm49_vm0, %v456_v1, -inf  ;;  %v66_v7 = vsel %vm49_vm0, %v454_v0, inf  ;;  %v67_v10 = vsel %vm49_vm0, %v456_v1, inf }
  0x27   :  { %v52_v6 = vsel %vm49_vm0, %v458_v2, -inf  ;;  %v53_v8 = vsel %vm49_vm0, %v460_v3, -inf  ;;  %v54_v9 = vmax.f32 %v50_v4, %v51_v5  ;;  %v68_v11 = vsel %vm49_vm0, %v458_v2, inf  ;;  %s268_s20 = sshll.u32 %s406_s19, 4  ;;  %s269_s20 = int_to_ptr.vmem [resolvable:$true] %s268_s20 }
  0x28   :  { %v55_v12 = vmax.f32 %v52_v6, %v53_v8  ;;  %v69_v13 = vsel %vm49_vm0, %v460_v3, inf  ;;  %v70_v14 = vmin.f32 %v66_v7, %v67_v10  ;;  %v166_v10 = vld [vmem:[#allocation4] sm:$0xff]  ;;  %s374_s21 = scalar_lea.vmem %s269_s20, 256  ;;  %p379_p4 = scmp.lt.s32.totalorder %s269_s20, %s269_s20 }
  0x29   :  { %v71_v15 = vmin.f32 %v68_v11, %v69_v13  ;;  %301 = vmatprep.mubr.msk.f32.mxu0 %vm49_vm0, %v166_v10  ;;  %p375_p3 = scmp.ne.s32.totalorder %s269_s20, %s374_s21  ;;  %p380_p5 = scmp.lt.s32.totalorder %s374_s21, %s374_s21 }
  0x2a   :  { %v56_v16 = vmax.f32 %v54_v9, %v55_v12 }
  0x2b   :  { %v72_v17 = vmin.f32 %v70_v14, %v71_v15  ;;  %p381_p6 = por %p380_p5, %p379_p4 }
  0x2c   :  { %57 = vmax.xlane.f32.xlu0 %v56_v16 }
  0x2d   :  { %p382_p7 = pnand %p381_p6, %p375_p3 }
  0x30   :  { %73 = vmin.xlane.f32.xlu0 %v72_v17  ;;  %v167_v17 = vld [vmem:[#allocation4 + $0x8] sm:$0xff] }
  0xb9   :  { %v58_v18 = vpop.xlane.xlu0 %57 }
  0xba   :  { %v59_v19 = vrot.slane %v58_v18, 4 }
  0xbc   :  { %v60_v20 = vmax.f32 %v58_v18, %v59_v19  ;;  %v284_v18 = vld [vmem:[%s520_s2] ss:$0 sm:$0xff] }
  0xbd   :  { %v74_v21 = vpop.xlane.xlu0 %73 }
  0xbe   :  { %v61_v22 = vrot.slane %v60_v20, 2  ;;  %v75_v23 = vrot.slane %v74_v21, 4 }
  0xc0   :  { %v76_v24 = vmin.f32 %v74_v21, %v75_v23  ;;  %v62_v25 = vmax.f32 %v60_v20, %v61_v22 }
  0xc2   :  { %v77_v26 = vrot.slane %v76_v24, 2  ;;  %v63_v27 = vrot.slane %v62_v25, 1 }
  0xc4   :  { %v78_v28 = vmin.f32 %v76_v24, %v77_v26  ;;  %v64_v29 = vmax.f32 %v62_v25, %v63_v27 }
  0xc6   :  { %312 = vpush %v64_v29  ;;  %v79_v30 = vrot.slane %v78_v28, 1 }
  0xc8   :  { %v80_v31 = vmin.f32 %v78_v28, %v79_v30 }
  0xca   :  { %314 = vpush %v80_v31 }
  0xf7   :  { %s313_s1 = spop %312 }
  0xfb   :  { %s315_s10 = spop %314 }
  0xfc   :  { %s82_s11 = ssub.f32 %s313_s1, %s315_s10  ;;  %v85_v34 = vstv %s315_s10 }
  0xfd   :  { %v86_v35 = vsub.f32 %v454_v0, %v85_v34  ;;  %v87_v36 = vsub.f32 %v456_v1, %v85_v34  ;;  %v88_v37 = vsub.f32 %v458_v2, %v85_v34  ;;  %v89_v38 = vsub.f32 %v460_v3, %v85_v34 }
  0xfe   :  { %p83_p2 = scmp.le.f32.partialorder %s82_s11, 0.0 }
 0x100   :  { %s479_s12 = scalar_select %p83_p2, 1.0, %s82_s11 }
 0x101   :  { %s123_s15 = scalar_select %p83_p2, 1, 0 }
 0x102   :  { %v90_v32 = vstv %s479_s12  ;;  %s113_s16 = smul.f32 0.003921569, %s479_s12 }
 0x103   :  { %328 = vrcp.f32 %v90_v32  ;;  %v124_v57 = vstv %s123_s15 }
 0x104   :  { %v114_v56 = vstv %s113_s16  ;;  %vm125_vm1 = vcmp.eq.s32.totalorder %v124_v57, 1 }
 0x10d   :  { %v329_v33 = vpop.eup %328 }
 0x10e   :  { %316 = vpush %v329_v33 }
 0x13f   :  { %s317_s13 = spop %316 }
 0x140   :  { %s93_s14 = smul.f32 255.0, %s317_s13 }
 0x142   :  { %v94_v39 = vstv %s93_s14 }
 0x143   :  { %v95_v40 = vmul.f32 %v94_v39, %v86_v35  ;;  %v96_v41 = vmul.f32 %v94_v39, %v87_v36  ;;  %v97_v42 = vmul.f32 %v94_v39, %v88_v37  ;;  %v98_v43 = vmul.f32 %v94_v39, %v89_v38 }
 0x145   :  { %v280_v44 = vadd.f32 -128.0, %v95_v40  ;;  %v281_v45 = vadd.f32 -128.0, %v96_v41  ;;  %v282_v46 = vadd.f32 -128.0, %v97_v42  ;;  %v283_v47 = vadd.f32 -128.0, %v98_v43 }
 0x147   :  { %v318_v48 = vround.rtne.f32 %v280_v44  ;;  %v319_v49 = vround.rtne.f32 %v281_v45  ;;  %v320_v50 = vround.rtne.f32 %v282_v46  ;;  %v321_v51 = vround.rtne.f32 %v283_v47 }
 0x149   :  { %v107_v52 = vadd.f32 128.0, %v318_v48  ;;  %v108_v53 = vadd.f32 128.0, %v319_v49  ;;  %v109_v54 = vadd.f32 128.0, %v320_v50  ;;  %v110_v55 = vadd.f32 128.0, %v321_v51 }
 0x14b   :  { %v115_v58 = vmul.f32 %v114_v56, %v107_v52  ;;  %v116_v59 = vmul.f32 %v114_v56, %v108_v53  ;;  %v117_v60 = vmul.f32 %v114_v56, %v109_v54  ;;  %v118_v61 = vmul.f32 %v114_v56, %v110_v55 }
 0x14d   :  { %v119_v62 = vadd.f32 %v115_v58, %v85_v34  ;;  %v120_v63 = vadd.f32 %v116_v59, %v85_v34  ;;  %v121_v4 = vadd.f32 %v117_v60, %v85_v34  ;;  %v122_v5 = vadd.f32 %v118_v61, %v85_v34 }
 0x14f   :  { %v126_v6 = vsel %vm125_vm1, %v454_v0, %v119_v62  ;;  %v127_v7 = vsel %vm125_vm1, %v456_v1, %v120_v63  ;;  %v128_v8 = vsel %vm125_vm1, %v458_v2, %v121_v4  ;;  %v129_v9 = vsel %vm125_vm1, %v460_v3, %v122_v5 }
 0x150   :  { %130 = vxpose.xlu1.b32.start [1/4] (short) (narrow) %v126_v6, 32 }
 0x154   :  { %131 = vxpose.xlu1.b32.cont [2/4] (short) (narrow) %v127_v7, 32 }
 0x158   :  { %132 = vxpose.xlu1.b32.cont [3/4] (short) (narrow) %v128_v8, 32 }
 0x15c   :  { %133 = vxpose.xlu1.b32.end [4/4] (short) (narrow) %v129_v9, 32 }
 0x1d0   :  { %v146_v11 = vpop.trf.xlu1 }
 0x1d1   :  { %162 = vst.msk [vmem:[#allocation2] sm:$0xff] %vm49_vm0, %v146_v11 }
 0x1d4   :  { %v147_v12 = vpop.trf.xlu1 }
 0x1d5   :  { %163 = vst.msk [vmem:[#allocation2 + $0x8] sm:$0xff] %vm49_vm0, %v147_v12 }
 0x1d8   :  { %v148_v0 = vpop.trf.xlu1  ;;  %v168_v2 = vld [vmem:[#allocation2] sm:$0xff] }
 0x1d9   :  { %164 = vst.msk [vmem:[#allocation2 + $0x10] sm:$0xff] %vm49_vm0, %v148_v0 }
 0x1dc   :  { %v149_v1 = vpop.trf.xlu1  ;;  %v169_v13 = vld [vmem:[#allocation2 + $0x8] sm:$0xff] }
 0x1dd   :  { %165 = vst.msk [vmem:[#allocation2 + $0x18] sm:$0xff] %vm49_vm0, %v149_v1  ;;  %v304_v3 = vpack.c.bf16 %v169_v13, %v168_v2 }
 0x1df   :  { %305 = vmatprep.subr.bf16.mxu0 %v304_v3 }
 0x1e0   :  { %307 = vmatpush3.bf16.msra.mxu0 %v304_v3  ;;  %v170_v14 = vld [vmem:[#allocation2 + $0x10] sm:$0xff] }
 0x1e4   :  { %v171_v15 = vld [vmem:[#allocation2 + $0x18] sm:$0xff] }
 0x1e5   :  { %v308_v16 = vpack.c.bf16 %v171_v15, %v170_v14 }
 0x1e7   :  { %309 = vmatprep.subr.bf16.mxu0 %v308_v16 }
 0x1e8   :  { %311 = vmatpush3.bf16.msra.mxu0 %v308_v16 }
 0x1eb   :  { %302 = vmatmul.mubr.msk.f32.vlgmr.msra.gmra.mrb[0].mxu0 %vm49_vm0, %v167_v17 }
 0x2be   :  { %v303_v19 = vpop.f32.mrb[0].mxu0 }
 0x2bf   :  { %v258_v20 = vadd.f32 %v303_v19, %v284_v18  ;;  %v252_v21 = vpop.f32.mrb[1].mxu0 }
 0x2c0   :  { %v253_v22 = vadd.f32 %v284_v18, %v252_v21 }
 0x2c1   :  { %262 = vst.msk [vmem:[#allocation7 + $0x8] sm:$0xff] %vm49_vm0, %v258_v20 }
 0x2c2   :  { %261 = vst.msk [vmem:[#allocation7] sm:$0xff] %vm49_vm0, %v253_v22 }
 0x2c3   :  { %385 = shalt.err (!%p382_p7)
}
 0x2c4   :  { %s386_s25 = scalar_lea.hbm %s521_s3, 256 }
 0x2c5   :  { %p387_p8 = scmp.ne.s32.totalorder %s521_s3, %s386_s25  ;;  %p390_p9 = scmp.lt.u32.totalorder %s386_s25, %s521_s3 }
 0x2c7   :  { %p392_p10 = pnand %p390_p9, %p387_p8 }
 0x2c9   :  { %395 = shalt.err (!%p392_p10)
}
 0x2ca   :  { %274 = dma.vmem_to_hbm [thread:$0]  %s269_s20, 256, %s521_s3, [#allocation6], %s403_s22, %s403_s22, %s404_s23  }
 0x2cb   :  { %400 = dma.done.wait [#allocation6], 256  }
 0x2cc   :  { %401 = vsyncadd [#allocation6], 4294967040 }
 0x2cd   :  { %278 = vsyncpa [#allocation5], 1 }
 0x2ce   :  { %279 = vsyncpa [#allocation6], 1 }

</bundles_post_ra>
